<compile_context>
chip_gen: v5e
topology: v5e:2x2
jax: 0.10.0
libtpu: 0.0.40
codegen_flags: <defaults>
</compile_context>

<pallas_src>
import functools

import jax
import jax.numpy as jnp
import numpy as np
from jax.experimental import pallas as pl
from jax.experimental.pallas import tpu as pltpu

_LANE = 128


# ----------------------------------------------------------------------------
# Kernel: full encoder -> decoder chain for one batch tile.
# ----------------------------------------------------------------------------
def _autoencoder_kernel(
    x_ref,        # (bm, F)
    enc_w0_ref,   # (F, H)
    enc_b0_ref,   # (1, H)          f32
    enc_wh_ref,   # (Le, H, H)
    enc_bh_ref,   # (Le, 1, H)      f32
    enc_wl_ref,   # (H, Z)
    enc_bl_ref,   # (1, Z)          f32
    dec_w0_ref,   # (Z, H)
    dec_b0_ref,   # (1, H)          f32
    dec_wh_ref,   # (Ld, H, H)
    dec_bh_ref,   # (Ld, 1, H)      f32
    dec_wl_ref,   # (H, Fp)  lane-padded
    dec_bl_ref,   # (1, Fp)         f32
    out_ref,      # (bm, Fp)        f32
    *,
    nonlinearity,
):
    if nonlinearity == "ReLU":
        nl = lambda v: jnp.maximum(v, 0.0)
    elif nonlinearity == "ELU":
        nl = lambda v: jnp.where(v > 0.0, v, jnp.expm1(v))
    else:
        raise ValueError(f"unsupported nonlinearity: {nonlinearity}")

    num_enc_hidden = enc_wh_ref.shape[0]
    num_dec_hidden = dec_wh_ref.shape[0]

    def dense(h, w, b, activate):
        # bf16/f32 inputs, always f32 accumulation on the MXU.
        y = jnp.dot(h.astype(w.dtype), w, preferred_element_type=jnp.float32)
        y = y + b
        return nl(y) if activate else y

    # ---------------- encoder ----------------
    h = dense(x_ref[...], enc_w0_ref[...], enc_b0_ref[...], True)
    for l in range(num_enc_hidden):                 # static unroll
        h = dense(h, enc_wh_ref[l], enc_bh_ref[l], True)
    z = dense(h, enc_wl_ref[...], enc_bl_ref[...], False)     # latent (no NL)

    # ---------------- decoder ----------------
    h = dense(z, dec_w0_ref[...], dec_b0_ref[...], True)
    for l in range(num_dec_hidden):
        h = dense(h, dec_wh_ref[l], dec_bh_ref[l], True)
    y = dense(h, dec_wl_ref[...], dec_bl_ref[...], False)

    out_ref[...] = jax.nn.sigmoid(y).astype(out_ref.dtype)    # lane-dense store


# ----------------------------------------------------------------------------
# Wrapper: lane-pads the output projection, optionally tiles the batch, and
# calls the kernel.
# ----------------------------------------------------------------------------
def autoencoder_forward(
    x,
    params,
    *,
    nonlinearity="ReLU",
    compute_dtype=jnp.float32,   # use jnp.bfloat16 on v6e/v7x for the MXU fast path
    block_batch=None,            # batch tile size; None = whole batch in one tile
):
    B, F = x.shape
    H = params["enc_w0"].shape[-1]

    # Lane-dense output: pad the last projection to a multiple of 128 lanes so
    # the output block store is an unmasked full-vreg vst.
    Fp = max(_LANE, ((F + _LANE - 1) // _LANE) * _LANE)
    dec_wl = params["dec_wl"]
    dec_bl = params["dec_bl"]
    if Fp != F:
        dec_wl = jnp.pad(dec_wl, ((0, 0), (0, Fp - F)))
        dec_bl = jnp.pad(dec_bl, ((0, 0), (0, Fp - F)))

    # Batch tiling (single "parallel" grid axis; grid=(1,) at small B).
    bm = B if block_batch is None else max(1, min(block_batch, B))
    Bp = pl.cdiv(B, bm) * bm
    xp = x if Bp == B else jnp.pad(x, ((0, Bp - B), (0, 0)))

    cast_w = lambda w: w.astype(compute_dtype)
    weight_args = [
        cast_w(params["enc_w0"]), params["enc_b0"].astype(jnp.float32),
        cast_w(params["enc_wh"]), params["enc_bh"].astype(jnp.float32),
        cast_w(params["enc_wl"]), params["enc_bl"].astype(jnp.float32),
        cast_w(params["dec_w0"]), params["dec_b0"].astype(jnp.float32),
        cast_w(params["dec_wh"]), params["dec_bh"].astype(jnp.float32),
        cast_w(dec_wl),           dec_bl.astype(jnp.float32),
    ]

    # Full-array blocks for weights; constant index_map => no re-DMA across tiles.
    def rep(a):
        nd = a.ndim
        return pl.BlockSpec(a.shape, lambda i, _nd=nd: (0,) * _nd)

    out = pl.pallas_call(
        functools.partial(_autoencoder_kernel, nonlinearity=nonlinearity),
        out_shape=jax.ShapeDtypeStruct((Bp, Fp), jnp.float32),
        grid_spec=pltpu.PrefetchScalarGridSpec(
            num_scalar_prefetch=0,
            grid=(Bp // bm,),
            in_specs=[pl.BlockSpec((bm, F), lambda i: (i, 0))]
                     + [rep(a) for a in weight_args],
            out_specs=pl.BlockSpec((bm, Fp), lambda i: (i, 0)),
        ),
        compiler_params=pltpu.CompilerParams(
            dimension_semantics=("parallel",),
        ),
    )(xp.astype(compute_dtype), *weight_args)

    return out[:B, :F]   # strip batch and lane padding


# ----------------------------------------------------------------------------
# Deterministic synthetic parameters (nn.Linear-style, pre-transposed).
# ----------------------------------------------------------------------------
def build_params(key, n_features, hidden, latent, num_encoder_layers, num_decoder_layers):
    F, H, Z = n_features, hidden, latent
    Le, Ld = num_encoder_layers, num_decoder_layers
    keys = jax.random.split(key, 12)

    def w(k, shape, fan_in):
        return (jax.random.normal(k, shape, jnp.float32) / np.sqrt(fan_in)).astype(jnp.float32)

    return {
        "enc_w0": w(keys[0], (F, H), F),
        "enc_b0": 0.01 * jax.random.normal(keys[1], (1, H), jnp.float32),
        "enc_wh": w(keys[2], (Le, H, H), H),
        "enc_bh": 0.01 * jax.random.normal(keys[3], (Le, 1, H), jnp.float32),
        "enc_wl": w(keys[4], (H, Z), H),
        "enc_bl": 0.01 * jax.random.normal(keys[5], (1, Z), jnp.float32),
        "dec_w0": w(keys[6], (Z, H), Z),
        "dec_b0": 0.01 * jax.random.normal(keys[7], (1, H), jnp.float32),
        "dec_wh": w(keys[8], (Ld, H, H), H),
        "dec_bh": 0.01 * jax.random.normal(keys[9], (Ld, 1, H), jnp.float32),
        "dec_wl": w(keys[10], (H, F), H),
        "dec_bl": 0.01 * jax.random.normal(keys[11], (1, F), jnp.float32),
    }


# ----------------------------------------------------------------------------
# Pure-JAX reference (mirrors the torch forward) for correctness checking.
# ----------------------------------------------------------------------------
def reference_forward(x, params, nonlinearity="ReLU"):
    nl = (lambda v: jnp.maximum(v, 0.0)) if nonlinearity == "ReLU" \
        else (lambda v: jnp.where(v > 0.0, v, jnp.expm1(v)))
    Le = params["enc_wh"].shape[0]
    Ld = params["dec_wh"].shape[0]

    h = nl(x @ params["enc_w0"] + params["enc_b0"])
    for l in range(Le):
        h = nl(h @ params["enc_wh"][l] + params["enc_bh"][l])
    z = h @ params["enc_wl"] + params["enc_bl"]

    h = nl(z @ params["dec_w0"] + params["dec_b0"])
    for l in range(Ld):
        h = nl(h @ params["dec_wh"][l] + params["dec_bh"][l])
    y = h @ params["dec_wl"] + params["dec_bl"]
    return jax.nn.sigmoid(y)


if __name__ == "__main__":
    # Small shapes consistent with the module (defaults scaled down).
    B = 8
    n_features = 16
    hidden_features = 32
    latent_dimension = 8
    num_encoder_layers = 2
    num_decoder_layers = 2

    key = jax.random.PRNGKey(0)
    kx, kp = jax.random.split(key)
    x = jax.random.normal(kx, (B, n_features), jnp.float32)
    params = build_params(kp, n_features, hidden_features, latent_dimension,
                          num_encoder_layers, num_decoder_layers)

    ref = reference_forward(x, params)

    # f32 compute path (exact vs. reference).
    out_f32 = jax.block_until_ready(autoencoder_forward(x, params))
    np.testing.assert_allclose(np.asarray(out_f32), np.asarray(ref),
                               rtol=1e-5, atol=1e-5)

    # bf16 compute path (v6e/v7x MXU fast path), f32 accumulation in-kernel.
    out_bf16 = jax.block_until_ready(
        autoencoder_forward(x, params, compute_dtype=jnp.bfloat16))
    np.testing.assert_allclose(np.asarray(out_bf16), np.asarray(ref),
                               rtol=3e-2, atol=3e-2)

    print("KERNEL_OK")
</pallas_src>

<mosaic_0001>
module attributes {stable_mosaic.version = 11 : i64} {
  func.func @_autoencoder_kernel(%arg0: i32, %arg1: memref<8x16xf32, #tpu.memory_space<vmem>>, %arg2: memref<16x32xf32, #tpu.memory_space<vmem>>, %arg3: memref<1x32xf32, #tpu.memory_space<vmem>>, %arg4: memref<2x32x32xf32, #tpu.memory_space<vmem>>, %arg5: memref<2x1x32xf32, #tpu.memory_space<vmem>>, %arg6: memref<32x8xf32, #tpu.memory_space<vmem>>, %arg7: memref<1x8xf32, #tpu.memory_space<vmem>>, %arg8: memref<8x32xf32, #tpu.memory_space<vmem>>, %arg9: memref<1x32xf32, #tpu.memory_space<vmem>>, %arg10: memref<2x32x32xf32, #tpu.memory_space<vmem>>, %arg11: memref<2x1x32xf32, #tpu.memory_space<vmem>>, %arg12: memref<32x128xf32, #tpu.memory_space<vmem>>, %arg13: memref<1x128xf32, #tpu.memory_space<vmem>>, %arg14: memref<8x128xf32, #tpu.memory_space<vmem>>) attributes {dimension_semantics = [#tpu.dimension_semantics<parallel>], iteration_bounds = array<i64: 1>, scalar_prefetch = 0 : i64, scratch_operands = 0 : i64, tpu.core_type = #tpu.core_type<tc>, window_params = [{transform_indices = @transform_0, window_bounds = array<i64: 8, 16>}, {pipeline_mode = #tpu.pipeline_mode<synchronous>, transform_indices = @transform_1, window_bounds = array<i64: 16, 32>}, {pipeline_mode = #tpu.pipeline_mode<synchronous>, transform_indices = @transform_2, window_bounds = array<i64: 1, 32>}, {pipeline_mode = #tpu.pipeline_mode<synchronous>, transform_indices = @transform_3, window_bounds = array<i64: 2, 32, 32>}, {pipeline_mode = #tpu.pipeline_mode<synchronous>, transform_indices = @transform_4, window_bounds = array<i64: 2, 1, 32>}, {pipeline_mode = #tpu.pipeline_mode<synchronous>, transform_indices = @transform_5, window_bounds = array<i64: 32, 8>}, {pipeline_mode = #tpu.pipeline_mode<synchronous>, transform_indices = @transform_6, window_bounds = array<i64: 1, 8>}, {pipeline_mode = #tpu.pipeline_mode<synchronous>, transform_indices = @transform_7, window_bounds = array<i64: 8, 32>}, {pipeline_mode = #tpu.pipeline_mode<synchronous>, transform_indices = @transform_8, window_bounds = array<i64: 1, 32>}, {pipeline_mode = #tpu.pipeline_mode<synchronous>, transform_indices = @transform_9, window_bounds = array<i64: 2, 32, 32>}, {pipeline_mode = #tpu.pipeline_mode<synchronous>, transform_indices = @transform_10, window_bounds = array<i64: 2, 1, 32>}, {pipeline_mode = #tpu.pipeline_mode<synchronous>, transform_indices = @transform_11, window_bounds = array<i64: 32, 128>}, {pipeline_mode = #tpu.pipeline_mode<synchronous>, transform_indices = @transform_12, window_bounds = array<i64: 1, 128>}, {transform_indices = @transform_13, window_bounds = array<i64: 8, 128>}]} {
    %c0 = arith.constant 0 : index
    %c0_0 = arith.constant 0 : index
    %0 = vector.load %arg1[%c0, %c0_0] : memref<8x16xf32, #tpu.memory_space<vmem>>, vector<8x16xf32>
    %c0_1 = arith.constant 0 : index
    %c0_2 = arith.constant 0 : index
    %1 = vector.load %arg2[%c0_1, %c0_2] : memref<16x32xf32, #tpu.memory_space<vmem>>, vector<16x32xf32>
    %c0_3 = arith.constant 0 : index
    %c0_4 = arith.constant 0 : index
    %2 = vector.load %arg3[%c0_3, %c0_4] : memref<1x32xf32, #tpu.memory_space<vmem>>, vector<1x32xf32>
    %cst = arith.constant dense<0.000000e+00> : vector<8x32xf32>
    %3 = tpu.matmul %0, %1, %cst {dimension_numbers = #tpu.dot_dimension_numbers<[1], [0], [0], [1], [0, 0, 1, 1], [], []>} : vector<8x16xf32>, vector<16x32xf32>, vector<8x32xf32> -> vector<8x32xf32>
    %4 = vector.broadcast %2 : vector<1x32xf32> to vector<8x32xf32>
    %5 = arith.addf %3, %4 : vector<8x32xf32>
    %cst_5 = arith.constant 0.000000e+00 : f32
    %6 = vector.broadcast %cst_5 : f32 to vector<8x32xf32>
    %7 = arith.maximumf %5, %6 : vector<8x32xf32>
    %c0_6 = arith.constant 0 : index
    %c0_7 = arith.constant 0 : index
    %c0_8 = arith.constant 0 : index
    %8 = vector.load %arg4[%c0_6, %c0_7, %c0_8] : memref<2x32x32xf32, #tpu.memory_space<vmem>>, vector<1x32x32xf32>
    %9 = vector.shape_cast %8 : vector<1x32x32xf32> to vector<32x32xf32>
    %c0_9 = arith.constant 0 : index
    %c0_10 = arith.constant 0 : index
    %c0_11 = arith.constant 0 : index
    %10 = vector.load %arg5[%c0_9, %c0_10, %c0_11] : memref<2x1x32xf32, #tpu.memory_space<vmem>>, vector<1x1x32xf32>
    %11 = vector.shape_cast %10 : vector<1x1x32xf32> to vector<1x32xf32>
    %cst_12 = arith.constant dense<0.000000e+00> : vector<8x32xf32>
    %12 = tpu.matmul %7, %9, %cst_12 {dimension_numbers = #tpu.dot_dimension_numbers<[1], [0], [0], [1], [0, 0, 1, 1], [], []>} : vector<8x32xf32>, vector<32x32xf32>, vector<8x32xf32> -> vector<8x32xf32>
    %13 = vector.broadcast %11 : vector<1x32xf32> to vector<8x32xf32>
    %14 = arith.addf %12, %13 : vector<8x32xf32>
    %cst_13 = arith.constant 0.000000e+00 : f32
    %15 = vector.broadcast %cst_13 : f32 to vector<8x32xf32>
    %16 = arith.maximumf %14, %15 : vector<8x32xf32>
    %c1 = arith.constant 1 : index
    %c0_14 = arith.constant 0 : index
    %c0_15 = arith.constant 0 : index
    %17 = vector.load %arg4[%c1, %c0_14, %c0_15] : memref<2x32x32xf32, #tpu.memory_space<vmem>>, vector<1x32x32xf32>
    %18 = vector.shape_cast %17 : vector<1x32x32xf32> to vector<32x32xf32>
    %c1_16 = arith.constant 1 : index
    %c0_17 = arith.constant 0 : index
    %c0_18 = arith.constant 0 : index
    %19 = vector.load %arg5[%c1_16, %c0_17, %c0_18] : memref<2x1x32xf32, #tpu.memory_space<vmem>>, vector<1x1x32xf32>
    %20 = vector.shape_cast %19 : vector<1x1x32xf32> to vector<1x32xf32>
    %cst_19 = arith.constant dense<0.000000e+00> : vector<8x32xf32>
    %21 = tpu.matmul %16, %18, %cst_19 {dimension_numbers = #tpu.dot_dimension_numbers<[1], [0], [0], [1], [0, 0, 1, 1], [], []>} : vector<8x32xf32>, vector<32x32xf32>, vector<8x32xf32> -> vector<8x32xf32>
    %22 = vector.broadcast %20 : vector<1x32xf32> to vector<8x32xf32>
    %23 = arith.addf %21, %22 : vector<8x32xf32>
    %cst_20 = arith.constant 0.000000e+00 : f32
    %24 = vector.broadcast %cst_20 : f32 to vector<8x32xf32>
    %25 = arith.maximumf %23, %24 : vector<8x32xf32>
    %c0_21 = arith.constant 0 : index
    %c0_22 = arith.constant 0 : index
    %26 = vector.load %arg6[%c0_21, %c0_22] : memref<32x8xf32, #tpu.memory_space<vmem>>, vector<32x8xf32>
    %c0_23 = arith.constant 0 : index
    %c0_24 = arith.constant 0 : index
    %27 = vector.load %arg7[%c0_23, %c0_24] : memref<1x8xf32, #tpu.memory_space<vmem>>, vector<1x8xf32>
    %cst_25 = arith.constant dense<0.000000e+00> : vector<8x8xf32>
    %28 = tpu.matmul %25, %26, %cst_25 {dimension_numbers = #tpu.dot_dimension_numbers<[1], [0], [0], [1], [0, 0, 1, 1], [], []>} : vector<8x32xf32>, vector<32x8xf32>, vector<8x8xf32> -> vector<8x8xf32>
    %29 = vector.broadcast %27 : vector<1x8xf32> to vector<8x8xf32>
    %30 = arith.addf %28, %29 : vector<8x8xf32>
    %c0_26 = arith.constant 0 : index
    %c0_27 = arith.constant 0 : index
    %31 = vector.load %arg8[%c0_26, %c0_27] : memref<8x32xf32, #tpu.memory_space<vmem>>, vector<8x32xf32>
    %c0_28 = arith.constant 0 : index
    %c0_29 = arith.constant 0 : index
    %32 = vector.load %arg9[%c0_28, %c0_29] : memref<1x32xf32, #tpu.memory_space<vmem>>, vector<1x32xf32>
    %cst_30 = arith.constant dense<0.000000e+00> : vector<8x32xf32>
    %33 = tpu.matmul %30, %31, %cst_30 {dimension_numbers = #tpu.dot_dimension_numbers<[1], [0], [0], [1], [0, 0, 1, 1], [], []>} : vector<8x8xf32>, vector<8x32xf32>, vector<8x32xf32> -> vector<8x32xf32>
    %34 = vector.broadcast %32 : vector<1x32xf32> to vector<8x32xf32>
    %35 = arith.addf %33, %34 : vector<8x32xf32>
    %cst_31 = arith.constant 0.000000e+00 : f32
    %36 = vector.broadcast %cst_31 : f32 to vector<8x32xf32>
    %37 = arith.maximumf %35, %36 : vector<8x32xf32>
    %c0_32 = arith.constant 0 : index
    %c0_33 = arith.constant 0 : index
    %c0_34 = arith.constant 0 : index
    %38 = vector.load %arg10[%c0_32, %c0_33, %c0_34] : memref<2x32x32xf32, #tpu.memory_space<vmem>>, vector<1x32x32xf32>
    %39 = vector.shape_cast %38 : vector<1x32x32xf32> to vector<32x32xf32>
    %c0_35 = arith.constant 0 : index
    %c0_36 = arith.constant 0 : index
    %c0_37 = arith.constant 0 : index
    %40 = vector.load %arg11[%c0_35, %c0_36, %c0_37] : memref<2x1x32xf32, #tpu.memory_space<vmem>>, vector<1x1x32xf32>
    %41 = vector.shape_cast %40 : vector<1x1x32xf32> to vector<1x32xf32>
    %cst_38 = arith.constant dense<0.000000e+00> : vector<8x32xf32>
    %42 = tpu.matmul %37, %39, %cst_38 {dimension_numbers = #tpu.dot_dimension_numbers<[1], [0], [0], [1], [0, 0, 1, 1], [], []>} : vector<8x32xf32>, vector<32x32xf32>, vector<8x32xf32> -> vector<8x32xf32>
    %43 = vector.broadcast %41 : vector<1x32xf32> to vector<8x32xf32>
    %44 = arith.addf %42, %43 : vector<8x32xf32>
    %cst_39 = arith.constant 0.000000e+00 : f32
    %45 = vector.broadcast %cst_39 : f32 to vector<8x32xf32>
    %46 = arith.maximumf %44, %45 : vector<8x32xf32>
    %c1_40 = arith.constant 1 : index
    %c0_41 = arith.constant 0 : index
    %c0_42 = arith.constant 0 : index
    %47 = vector.load %arg10[%c1_40, %c0_41, %c0_42] : memref<2x32x32xf32, #tpu.memory_space<vmem>>, vector<1x32x32xf32>
    %48 = vector.shape_cast %47 : vector<1x32x32xf32> to vector<32x32xf32>
    %c1_43 = arith.constant 1 : index
    %c0_44 = arith.constant 0 : index
    %c0_45 = arith.constant 0 : index
    %49 = vector.load %arg11[%c1_43, %c0_44, %c0_45] : memref<2x1x32xf32, #tpu.memory_space<vmem>>, vector<1x1x32xf32>
    %50 = vector.shape_cast %49 : vector<1x1x32xf32> to vector<1x32xf32>
    %cst_46 = arith.constant dense<0.000000e+00> : vector<8x32xf32>
    %51 = tpu.matmul %46, %48, %cst_46 {dimension_numbers = #tpu.dot_dimension_numbers<[1], [0], [0], [1], [0, 0, 1, 1], [], []>} : vector<8x32xf32>, vector<32x32xf32>, vector<8x32xf32> -> vector<8x32xf32>
    %52 = vector.broadcast %50 : vector<1x32xf32> to vector<8x32xf32>
    %53 = arith.addf %51, %52 : vector<8x32xf32>
    %cst_47 = arith.constant 0.000000e+00 : f32
    %54 = vector.broadcast %cst_47 : f32 to vector<8x32xf32>
    %55 = arith.maximumf %53, %54 : vector<8x32xf32>
    %c0_48 = arith.constant 0 : index
    %c0_49 = arith.constant 0 : index
    %56 = vector.load %arg12[%c0_48, %c0_49] : memref<32x128xf32, #tpu.memory_space<vmem>>, vector<32x128xf32>
    %c0_50 = arith.constant 0 : index
    %c0_51 = arith.constant 0 : index
    %57 = vector.load %arg13[%c0_50, %c0_51] : memref<1x128xf32, #tpu.memory_space<vmem>>, vector<1x128xf32>
    %cst_52 = arith.constant dense<0.000000e+00> : vector<8x128xf32>
    %58 = tpu.matmul %55, %56, %cst_52 {dimension_numbers = #tpu.dot_dimension_numbers<[1], [0], [0], [1], [0, 0, 1, 1], [], []>} : vector<8x32xf32>, vector<32x128xf32>, vector<8x128xf32> -> vector<8x128xf32>
    %59 = vector.broadcast %57 : vector<1x128xf32> to vector<8x128xf32>
    %60 = arith.addf %58, %59 : vector<8x128xf32>
    %61 = arith.negf %60 : vector<8x128xf32>
    %62 = math.exp %61 : vector<8x128xf32>
    %cst_53 = arith.constant 1.000000e+00 : f32
    %63 = vector.broadcast %cst_53 : f32 to vector<8x128xf32>
    %64 = arith.addf %63, %62 : vector<8x128xf32>
    %65 = arith.divf %63, %64 : vector<8x128xf32>
    %c0_54 = arith.constant 0 : index
    %c0_55 = arith.constant 0 : index
    %66 = vector.load %arg14[%c0_54, %c0_55] : memref<8x128xf32, #tpu.memory_space<vmem>>, vector<8x128xf32>
    tpu.vector_store %arg14[%c0_54, %c0_55], %65 {strides = array<i32>} : memref<8x128xf32, #tpu.memory_space<vmem>>, vector<8x128xf32>,
    return
  }
  func.func @transform_0(%arg0: i32) -> (i32, i32) {
    %c0_i32 = arith.constant 0 : i32
    %c0_i32_0 = arith.constant 0 : i32
    return %arg0, %c0_i32 : i32, i32
  }
  func.func @transform_1(%arg0: i32) -> (i32, i32) {
    %c0_i32 = arith.constant 0 : i32
    %c0_i32_0 = arith.constant 0 : i32
    %c0_i32_1 = arith.constant 0 : i32
    return %c0_i32, %c0_i32_0 : i32, i32
  }
  func.func @transform_2(%arg0: i32) -> (i32, i32) {
    %c0_i32 = arith.constant 0 : i32
    %c0_i32_0 = arith.constant 0 : i32
    %c0_i32_1 = arith.constant 0 : i32
    return %c0_i32, %c0_i32_0 : i32, i32
  }
  func.func @transform_3(%arg0: i32) -> (i32, i32, i32) {
    %c0_i32 = arith.constant 0 : i32
    %c0_i32_0 = arith.constant 0 : i32
    %c0_i32_1 = arith.constant 0 : i32
    %c0_i32_2 = arith.constant 0 : i32
    return %c0_i32, %c0_i32_0, %c0_i32_1 : i32, i32, i32
  }
  func.func @transform_4(%arg0: i32) -> (i32, i32, i32) {
    %c0_i32 = arith.constant 0 : i32
    %c0_i32_0 = arith.constant 0 : i32
    %c0_i32_1 = arith.constant 0 : i32
    %c0_i32_2 = arith.constant 0 : i32
    return %c0_i32, %c0_i32_0, %c0_i32_1 : i32, i32, i32
  }
  func.func @transform_5(%arg0: i32) -> (i32, i32) {
    %c0_i32 = arith.constant 0 : i32
    %c0_i32_0 = arith.constant 0 : i32
    %c0_i32_1 = arith.constant 0 : i32
    return %c0_i32, %c0_i32_0 : i32, i32
  }
  func.func @transform_6(%arg0: i32) -> (i32, i32) {
    %c0_i32 = arith.constant 0 : i32
    %c0_i32_0 = arith.constant 0 : i32
    %c0_i32_1 = arith.constant 0 : i32
    return %c0_i32, %c0_i32_0 : i32, i32
  }
  func.func @transform_7(%arg0: i32) -> (i32, i32) {
    %c0_i32 = arith.constant 0 : i32
    %c0_i32_0 = arith.constant 0 : i32
    %c0_i32_1 = arith.constant 0 : i32
    return %c0_i32, %c0_i32_0 : i32, i32
  }
  func.func @transform_8(%arg0: i32) -> (i32, i32) {
    %c0_i32 = arith.constant 0 : i32
    %c0_i32_0 = arith.constant 0 : i32
    %c0_i32_1 = arith.constant 0 : i32
    return %c0_i32, %c0_i32_0 : i32, i32
  }
  func.func @transform_9(%arg0: i32) -> (i32, i32, i32) {
    %c0_i32 = arith.constant 0 : i32
    %c0_i32_0 = arith.constant 0 : i32
    %c0_i32_1 = arith.constant 0 : i32
    %c0_i32_2 = arith.constant 0 : i32
    return %c0_i32, %c0_i32_0, %c0_i32_1 : i32, i32, i32
  }
  func.func @transform_10(%arg0: i32) -> (i32, i32, i32) {
    %c0_i32 = arith.constant 0 : i32
    %c0_i32_0 = arith.constant 0 : i32
    %c0_i32_1 = arith.constant 0 : i32
    %c0_i32_2 = arith.constant 0 : i32
    return %c0_i32, %c0_i32_0, %c0_i32_1 : i32, i32, i32
  }
  func.func @transform_11(%arg0: i32) -> (i32, i32) {
    %c0_i32 = arith.constant 0 : i32
    %c0_i32_0 = arith.constant 0 : i32
    %c0_i32_1 = arith.constant 0 : i32
    return %c0_i32, %c0_i32_0 : i32, i32
  }
  func.func @transform_12(%arg0: i32) -> (i32, i32) {
    %c0_i32 = arith.constant 0 : i32
    %c0_i32_0 = arith.constant 0 : i32
    %c0_i32_1 = arith.constant 0 : i32
    return %c0_i32, %c0_i32_0 : i32, i32
  }
  func.func @transform_13(%arg0: i32) -> (i32, i32) {
    %c0_i32 = arith.constant 0 : i32
    %c0_i32_0 = arith.constant 0 : i32
    return %arg0, %c0_i32 : i32, i32
  }
}

</mosaic_0001>

<bundles_post_ra>
// kernel: tpu_custom_call.1
= control target key start
LH: loop header
LB: loop body
LE: loop exit
PB: predicated region body
PF: predicated region fallthrough
CT: control target
= control target key end

     0   :  { %18 = vsyncpa [#allocation3], 0  ;;  %s876_s0 = inlined_call_operand.hbm [shape: f32[8,16], index: 0, kind: input, shape index: {}]   ;;  %s877_s1 = inlined_call_operand.vmem [shape: f32[16,32], index: 1, kind: input, shape index: {}]   ;;  %s878_s2 = inlined_call_operand.hbm [shape: f32[1,32], index: 2, kind: input, shape index: {}]   ;;  %s879_s3 = inlined_call_operand.hbm [shape: f32[2,32,32], index: 3, kind: input, shape index: {}]   ;;  %s880_s4 = inlined_call_operand.vmem [shape: f32[2,1,32], index: 4, kind: input, shape index: {}]   ;;  %s881_s5 = inlined_call_operand.vmem [shape: f32[32,8], index: 5, kind: input, shape index: {}]   ;;  %s882_s6 = inlined_call_operand.hbm [shape: f32[1,8], index: 6, kind: input, shape index: {}]   ;;  %s883_s7 = inlined_call_operand.hbm [shape: f32[8,32], index: 7, kind: input, shape index: {}]   ;;  %s884_s8 = inlined_call_operand.hbm [shape: f32[1,32], index: 8, kind: input, shape index: {}]   ;;  %s885_s9 = inlined_call_operand.hbm [shape: f32[2,32,32], index: 9, kind: input, shape index: {}]   ;;  %s886_s10 = inlined_call_operand.hbm [shape: f32[2,1,32], index: 10, kind: input, shape index: {}]   ;;  %s887_s11 = inlined_call_operand.vmem [shape: f32[32,128], index: 11, kind: input, shape index: {}]   ;;  %s888_s12 = inlined_call_operand.vmem [shape: f32[1,128], index: 12, kind: input, shape index: {}]   ;;  %s889_s13 = inlined_call_operand.hbm [shape: f32[8,128], index: 13, kind: output, shape index: {}]  }
   0x1   :  { %19 = vsyncpa [#allocation6], 0 }
   0x2   :  { %20 = vsyncpa [#allocation9], 0 }
   0x3   :  { %21 = vsyncpa [#allocation12], 0 }
   0x4   :  { %22 = vsyncpa [#allocation15], 0  ;;  %s42_s27 = sshll.u32 %s878_s2, 4  ;;  %s43_s27 = int_to_ptr.hbm [resolvable:$true] %s42_s27 }
   0x5   :  { %23 = vsyncpa [#allocation4], 0  ;;  %s721_s28 = smov [#allocation5]   ;;  %s70_s15 = sshll.u32 %s882_s6, 4  ;;  %s71_s15 = int_to_ptr.hbm [resolvable:$true] %s70_s15 }
   0x6   :  { %s44_s29 = sshll.u32 %s721_s28, 4  ;;  %s722_s16 = smov [#allocation8]   ;;  %s45_s29 = int_to_ptr.vmem [resolvable:$true] %s44_s29 }
   0x7   :  { %47 = dma.hbm_to_vmem [thread:$0]  %s43_s27, 16, %s45_s29, [#allocation6]  }
   0x8   :  { %s72_s17 = sshll.u32 %s722_s16, 4  ;;  %s92_s20 = sshll.u32 %s884_s8, 4  ;;  %s73_s17 = int_to_ptr.vmem [resolvable:$true] %s72_s17  ;;  %s93_s20 = int_to_ptr.hbm [resolvable:$true] %s92_s20 }
   0x9   :  { %75 = dma.hbm_to_vmem [thread:$0]  %s71_s15, 16, %s73_s17, [#allocation9]  }
   0xa   :  { %s29_s22 = sshll.u32 %s876_s0, 4  ;;  %s723_s23 = smov [#allocation11]   ;;  %s30_s22 = int_to_ptr.hbm [resolvable:$true] %s29_s22 }
   0xb   :  { %s94_s24 = sshll.u32 %s723_s23, 4  ;;  %s724_s6 = smov [#allocation2]   ;;  %s95_s24 = int_to_ptr.vmem [resolvable:$true] %s94_s24 }
   0xc   :  { %97 = dma.hbm_to_vmem [thread:$0]  %s93_s20, 16, %s95_s24, [#allocation12]  }
   0xd   :  { %s31_s25 = sshll.u32 %s724_s6, 4  ;;  %s52_s28 = sshll.u32 %s879_s3, 4  ;;  %s32_s25 = int_to_ptr.vmem [resolvable:$true] %s31_s25  ;;  %s53_s28 = int_to_ptr.hbm [resolvable:$true] %s52_s28 }
   0xe   :  { %34 = dma.hbm_to_vmem [thread:$0]  %s30_s22, 128, %s32_s25, [#allocation3]  }
   0xf   :  { %s725_s8 = smov [#allocation7]   ;;  %s81_s0 = sshll.u32 %s883_s7, 4  ;;  %s82_s0 = int_to_ptr.hbm [resolvable:$true] %s81_s0 }
  0x10   :  { %s54_s29 = sshll.u32 %s725_s8, 4  ;;  %s726_s15 = smov 128   ;;  %s55_s29 = int_to_ptr.vmem [resolvable:$true] %s54_s29 }
  0x11   :  { %s727_s16 = smov 8   ;;  %s728_s17 = smov [#allocation10]  }
  0x12   :  { %60 = dma.hbm_to_vmem [thread:$0]  %s53_s28, 1024, %s55_s29, [#allocation6], %s726_s15, %s726_s15, %s727_s16  }
  0x13   :  { %s83_s18 = sshll.u32 %s728_s17, 4  ;;  %s102_s3 = sshll.u32 %s885_s9, 4  ;;  %s84_s18 = int_to_ptr.vmem [resolvable:$true] %s83_s18  ;;  %s103_s3 = int_to_ptr.hbm [resolvable:$true] %s102_s3 }
  0x14   :  { %86 = dma.hbm_to_vmem [thread:$0]  %s82_s0, 128, %s84_s18, [#allocation9]  }
  0x15   :  { %s115_s22 = sshll.u32 %s886_s10, 4  ;;  %s729_s23 = smov [#allocation13]   ;;  %s116_s22 = int_to_ptr.hbm [resolvable:$true] %s115_s22 }
  0x16   :  { %s104_s24 = sshll.u32 %s729_s23, 4  ;;  %s730_s7 = smov [#allocation14]   ;;  %s105_s24 = int_to_ptr.vmem [resolvable:$true] %s104_s24 }
  0x17   :  { %110 = dma.hbm_to_vmem [thread:$0]  %s103_s3, 1024, %s105_s24, [#allocation12], %s726_s15, %s726_s15, %s727_s16  }
  0x18   :  { %s117_s6 = sshll.u32 %s730_s7, 4  ;;  %s731_s25 = smov 16   ;;  %s118_s6 = int_to_ptr.vmem [resolvable:$true] %s117_s6 }
  0x19   :  { %s732_s26 = smov 1  }
  0x1a   :  { %123 = dma.hbm_to_vmem [thread:$0]  %s116_s22, 32, %s118_s6, [#allocation15], %s731_s25, %s731_s25, %s732_s26  }
  0x1b   :  { %709 = dma.done.wait [#allocation3], 128  }
  0x1c   :  { %710 = vsyncadd [#allocation3], 4294967168 }
  0x1d   :  { %711 = dma.done.wait [#allocation6], 1040  }
  0x1e   :  { %712 = vsyncadd [#allocation6], 4294966256 }
  0x1f   :  { %713 = dma.done.wait [#allocation9], 144  }
  0x20   :  { %714 = vsyncadd [#allocation9], 4294967152 }
  0x21   :  { %715 = dma.done.wait [#allocation12], 1040  }
  0x22   :  { %716 = vsyncadd [#allocation12], 4294966256 }
  0x23   :  { %717 = dma.done.wait [#allocation15], 32  }
  0x24   :  { %718 = vsyncadd [#allocation15], 4294967264  ;;  %v162_v0 = vld [vmem:[%s877_s1 + $0x8] sm:$0xff]  ;;  %v161_v1 = vld [vmem:[%s877_s1] sm:$0xff]  ;;  %vm167_vm0 = vcmask 130048   ;;  %vm200_vm1 = vcmask 261120  }
  0x25   :  { %185 = vmatpush.msra.mxu0 %v162_v0  ;;  %v160_v2 = vld [vmem:[#allocation2] sm:$0xff]  ;;  %v193_v5 = vld [vmem:[#allocation7 + $0x8] sm:$0xff]  ;;  %v192_v6 = vld [vmem:[#allocation7] sm:$0xff]  ;;  %vm295_vm2 = vcmask 64512  }
  0x26   :  { %v195_v3 = vld [vmem:[#allocation7 + $0x18] sm:$0xff]  ;;  %v194_v4 = vld [vmem:[#allocation7 + $0x10] sm:$0xff]  ;;  %v227_v13 = vld [vmem:[#allocation7 + $0x28] sm:$0xff] }
  0x27   :  { %216 = vmatpush.msra.mxu1 %v195_v3  ;;  %186 = vmatpush.msra.mxu0 %v161_v1  ;;  %v229_v7 = vld [vmem:[#allocation7 + $0x38] sm:$0xff]  ;;  %v228_v12 = vld [vmem:[#allocation7 + $0x30] sm:$0xff]  ;;  %v226_v14 = vld [vmem:[#allocation7 + $0x20] sm:$0xff] }
  0x28   :  { %458 = vmatmul.msk.f32.vlgmr.msra.gmra.mxu0 %vm167_vm0, %v160_v2  ;;  %250 = vmatpush.msra.mxu2 %v229_v7  ;;  %v481_v8 = vld [vmem:[#allocation5] ss:$0 sm:$0xff]  ;;  %v262_v15 = vld [vmem:[%s881_s5 + $0x18] sm:$0xff]  ;;  %v482_v16 = vld [vmem:[%s880_s4] ss:$0 sm:$0xff] }
  0x29   :  { %217 = vmatpush.msra.mxu1 %v194_v4  ;;  %282 = vmatpush.msra.mxu3 %v262_v15  ;;  %v261_v20 = vld [vmem:[%s881_s5 + $0x10] sm:$0xff]  ;;  %v260_v21 = vld [vmem:[%s881_s5 + $0x8] sm:$0xff]  ;;  %v259_v22 = vld [vmem:[%s881_s5] sm:$0xff] }
  0x2a   :  { %251 = vmatpush.msra.mxu2 %v228_v12  ;;  %v290_v23 = vld [vmem:[#allocation10] sm:$0xff]  ;;  %v483_v24 = vld [vmem:[%s880_s4 + $0x1] ss:$0 sm:$0xff]  ;;  %v484_v30 = vld [vmem:[#allocation8] ss:$0 sm:$0xff] }
  0x2b   :  { %218 = vmatpush.msra.mxu1 %v193_v5  ;;  %283 = vmatpush.msra.mxu3 %v261_v20  ;;  %v323_v28 = vld [vmem:[#allocation13 + $0x18] sm:$0xff]  ;;  %v322_v29 = vld [vmem:[#allocation13 + $0x10] sm:$0xff]  ;;  %v321_v33 = vld [vmem:[#allocation13 + $0x8] sm:$0xff] }
  0x2c   :  { %252 = vmatpush.msra.mxu2 %v227_v13  ;;  %314 = vmatpush.msrb.mxu0 %v290_v23  ;;  %v320_v34 = vld [vmem:[#allocation13] sm:$0xff]  ;;  %v356_v35 = vld [vmem:[#allocation13 + $0x38] sm:$0xff]  ;;  %v355_v36 = vld [vmem:[#allocation13 + $0x30] sm:$0xff] }
  0x2d   :  { %219 = vmatpush.msra.mxu1 %v192_v6  ;;  %284 = vmatpush.msra.mxu3 %v260_v21  ;;  %v485_v37 = vld [vmem:[#allocation11] ss:$0 sm:$0xff]  ;;  %v354_v41 = vld [vmem:[#allocation13 + $0x28] sm:$0xff]  ;;  %v353_v42 = vld [vmem:[#allocation13 + $0x20] sm:$0xff] }
  0x2e   :  { %253 = vmatpush.msra.mxu2 %v226_v14  ;;  %v389_v43 = vld [vmem:[%s887_s11 + $0x18] sm:$0xff]  ;;  %v388_v44 = vld [vmem:[%s887_s11 + $0x10] sm:$0xff]  ;;  %v387_v49 = vld [vmem:[%s887_s11 + $0x8] sm:$0xff] }
  0x2f   :  { %285 = vmatpush.msra.mxu3 %v259_v22  ;;  %343 = vmatpush.msrb.mxu1 %v323_v28  ;;  %v486_v45 = vld [vmem:[#allocation14] ss:$0 sm:$0xff]  ;;  %v386_v50 = vld [vmem:[%s887_s11] sm:$0xff]  ;;  %v487_v51 = vld [vmem:[#allocation14 + $0x1] ss:$0 sm:$0xff]  ;;  %s733_s11 = smov [#allocation16]  }
  0x30   :  { %377 = vmatpush.msrb.mxu2 %v356_v35  ;;  %v488_v55 = vld [vmem:[%s888_s12] ss:$0 sm:$0xff]  ;;  %s442_s25 = sshll.u32 %s733_s11, 4  ;;  %s444_s12 = sshll.u32 %s889_s13, 4  ;;  %s443_s25 = int_to_ptr.vmem [resolvable:$true] %s442_s25  ;;  %s445_s12 = int_to_ptr.hbm [resolvable:$true] %s444_s12 }
  0x31   :  { %344 = vmatpush.msrb.mxu1 %v322_v29  ;;  %409 = vmatpush.msrb.mxu3 %v389_v43 }
  0x32   :  { %378 = vmatpush.msrb.mxu2 %v355_v36 }
  0x33   :  { %345 = vmatpush.msrb.mxu1 %v321_v33  ;;  %410 = vmatpush.msrb.mxu3 %v388_v44 }
  0x34   :  { %379 = vmatpush.msrb.mxu2 %v354_v41 }
  0x35   :  { %346 = vmatpush.msrb.mxu1 %v320_v34  ;;  %411 = vmatpush.msrb.mxu3 %v387_v49 }
  0x36   :  { %380 = vmatpush.msrb.mxu2 %v353_v42 }
  0x37   :  { %412 = vmatpush.msrb.mxu3 %v386_v50 }
  0xa5   :  { %v188_v9 = vpop.f32.mrf.mxu0 }
  0xa6   :  { %v189_v10 = vadd.f32 %v481_v8, %v188_v9 }
  0xa8   :  { %v191_v11 = vmax.f32 %v189_v10, 0.0 }
  0xaa   :  { %459 = vmatmul.msk.f32.vlgmr.msra.gmra.mxu1 %vm200_vm1, %v191_v11 }
 0x127   :  { %v221_v17 = vpop.f32.mrf.mxu1 }
 0x128   :  { %v222_v18 = vadd.f32 %v482_v16, %v221_v17 }
 0x12a   :  { %v224_v19 = vmax.f32 %v222_v18, 0.0 }
 0x12c   :  { %461 = vmatmul.msk.f32.vlgmr.msra.gmra.mxu2 %vm200_vm1, %v224_v19 }
 0x1af   :  { %v255_v25 = vpop.f32.mrf.mxu2 }
 0x1b0   :  { %v256_v26 = vadd.f32 %v483_v24, %v255_v25 }
 0x1b2   :  { %v258_v27 = vmax.f32 %v256_v26, 0.0 }
 0x1b4   :  { %462 = vmatmul.msk.f32.vlgmr.msra.gmra.mxu3 %vm200_vm1, %v258_v27 }
 0x237   :  { %v287_v31 = vpop.f32.mrf.mxu3 }
 0x238   :  { %v288_v32 = vadd.f32 %v484_v30, %v287_v31 }
 0x23a   :  { %463 = vmatmul.msk.f32.vlgmr.msrb.gmra.mxu0 %vm295_vm2, %v288_v32 }
 0x2b7   :  { %v316_v38 = vpop.f32.mrf.mxu0 }
 0x2b8   :  { %v317_v39 = vadd.f32 %v485_v37, %v316_v38 }
 0x2ba   :  { %v319_v40 = vmax.f32 %v317_v39, 0.0 }
 0x2bc   :  { %464 = vmatmul.msk.f32.vlgmr.msrb.gmra.mxu1 %vm200_vm1, %v319_v40 }
 0x339   :  { %v348_v46 = vpop.f32.mrf.mxu1 }
 0x33a   :  { %v349_v47 = vadd.f32 %v486_v45, %v348_v46 }
 0x33c   :  { %v351_v48 = vmax.f32 %v349_v47, 0.0 }
 0x33e   :  { %465 = vmatmul.msk.f32.vlgmr.msrb.gmra.mxu2 %vm200_vm1, %v351_v48 }
 0x3c1   :  { %v382_v52 = vpop.f32.mrf.mxu2 }
 0x3c2   :  { %v383_v53 = vadd.f32 %v487_v51, %v382_v52 }
 0x3c4   :  { %v385_v54 = vmax.f32 %v383_v53, 0.0 }
 0x3c6   :  { %466 = vmatmul.msk.f32.vlgmr.msrb.gmra.mxu3 %vm200_vm1, %v385_v54 }
 0x449   :  { %v414_v56 = vpop.f32.mrf.mxu3 }
 0x44a   :  { %v415_v57 = vadd.f32 %v488_v55, %v414_v56 }
 0x44c   :  { %v467_v58 = vmul.f32 -1.442695, %v415_v57 }
 0x44e   :  { %489 = vpow2.f32 %v467_v58 }
 0x454   :  { %v490_v59 = vpop.eup %489 }
 0x455   :  { %v420_v60 = vadd.f32 1.0, %v490_v59 }
 0x457   :  { %491 = vrcp.f32 %v420_v60  ;;  %v432_v0 = vand.u32 2147483648, %v420_v60  ;;  %v430_v2 = vand.u32 2147483647, %v420_v60  ;;  %vm426_vm4 = vweird.f32 %v420_v60 }
 0x459   :  { %v433_v4 = vor.u32 1.1754944e-38, %v432_v0  ;;  %vm431_vm6 = vcmp.eq.f32.partialorder %v430_v2, 8.507059e+37 }
 0x45d   :  { %v492_v61 = vpop.eup %491 }
 0x45e   :  { %v422_v62 = vmul.f32 %v492_v61, %v420_v60  ;;  %vm427_vm3 = vweird.f32 %v492_v61 }
 0x45f   :  { %vm428_vm5 = vmor %vm426_vm4, %vm427_vm3 }
 0x460   :  { %v423_v63 = vsub.f32 1.0, %v422_v62 }
 0x462   :  { %v424_v1 = vmul.f32 %v492_v61, %v423_v63 }
 0x464   :  { %v425_v3 = vadd.f32 %v492_v61, %v424_v1 }
 0x466   :  { %v429_v5 = vsel %vm428_vm5, %v492_v61, %v425_v3 }
 0x467   :  { %v434_v6 = vsel %vm431_vm6, %v433_v4, %v429_v5 }
 0x468   :  { %436 = vst [vmem:[#allocation16] sm:$0xff] %v434_v6 }
 0x469   :  { %447 = dma.vmem_to_hbm [thread:$0]  %s443_s25, 128, %s445_s12, [#allocation4]  }
 0x46a   :  { %719 = dma.done.wait [#allocation4], 128  }
 0x46b   :  { %720 = vsyncadd [#allocation4], 4294967168 }
 0x46c   :  { %452 = vsyncpa [#allocation3], 1 }
 0x46d   :  { %453 = vsyncpa [#allocation6], 1 }
 0x46e   :  { %454 = vsyncpa [#allocation9], 1 }
 0x46f   :  { %455 = vsyncpa [#allocation12], 1 }
 0x470   :  { %456 = vsyncpa [#allocation15], 1 }
 0x471   :  { %457 = vsyncpa [#allocation4], 1 }

</bundles_post_ra>
